<compile_context>
chip_gen: v6e
topology: v6e:2x2x1
jax: 0.10.0
libtpu: 0.0.40
codegen_flags: <defaults>
</compile_context>

<pallas_src>
import jax
import jax.numpy as jnp
from jax.experimental import pallas as pl
from jax.experimental.pallas import tpu as pltpu

# ---- static configuration ----------------------------------------------------
N, H, W = 2, 16, 16
HW = H * W
W_SHIFT = 4                # W == 16 == 1 << 4
IN_CHANNELS = 8            # -> edge_chs = 6, gaussian_chs = 2 (both branches used)
C = IN_CHANNELS
NC = N * C                 # batch folded into sublanes: 16 sublanes
K = 3
RATIO = 3.0 / 4.0


def make_divisible(v, divisor, min_value=None):
    if min_value is None:
        min_value = divisor
    new_v = max(min_value, int(v + divisor / 2) // divisor * divisor)
    if new_v < 0.9 * v:
        new_v += divisor
    return new_v


EDGE_CHS = make_divisible(IN_CHANNELS * RATIO, 6)
if EDGE_CHS > IN_CHANNELS:
    EDGE_CHS -= 6
GAUSS_CHS = IN_CHANNELS - EDGE_CHS


# ---- Pallas kernel: 3x3 depthwise conv, stride 1, pad 1 ----------------------
def dwconv3x3_kernel(x_ref, w_ref, o_ref):
    """x_ref: (NC, H*W)  batch*channels on sublanes, flattened spatial on lanes
       w_ref: (NC, 9)    per-(batch,channel) taps, row-major (kh, kw)
       o_ref: (NC, H*W)
    """
    x = x_ref[...]                    # (NC, HW)
    w = w_ref[...]                    # (NC, 9) — loaded once

    # Hoisted spatial index maps along the lane axis (shift/and, no div/mod).
    p = jax.lax.broadcasted_iota(jnp.int32, (NC, HW), 1)
    h_idx = p >> W_SHIFT              # p // W
    w_idx = p & (W - 1)               # p % W

    # Hoisted zero-padding boundary masks: 4 comparisons + 4 corner ANDs,
    # reused across all 8 masked taps.
    not_top = h_idx >= 1
    not_bot = h_idx < H - 1
    not_lft = w_idx >= 1
    not_rgt = w_idx < W - 1
    masks = {
        (-1, -1): not_top & not_lft, (-1, 0): not_top, (-1, 1): not_top & not_rgt,
        (0, -1): not_lft,            (0, 0): None,     (0, 1): not_rgt,
        (1, -1): not_bot & not_lft,  (1, 0): not_bot,  (1, 1): not_bot & not_rgt,
    }

    # Pre-broadcast the nine tap weights to full lane width, back-to-back,
    # so the broadcasts co-issue with the XLU rolls below.
    wb = [jnp.broadcast_to(w[:, t:t + 1], (NC, HW)) for t in range(K * K)]

    acc = jnp.zeros((NC, HW), jnp.float32)
    for kh in (-1, 0, 1):
        for kw in (-1, 0, 1):
            t = (kh + 1) * K + (kw + 1)
            delta = kh * W + kw                       # flat-index offset of tap
            if delta == 0:
                shifted = x
            else:
                # shifted[p] = x[p + delta]  (modulo wrap, masked below)
                shifted = pltpu.roll(x, (-delta) % HW, axis=1)
            m = masks[(kh, kw)]
            term = shifted if m is None else jnp.where(m, shifted, 0.0)
            acc = acc + term * wb[t]

    o_ref[...] = acc                                  # lane-dense (256) store


def sdd_depthwise_conv2d(x_nchw, w_taps):
    """x_nchw: (N, C, H, W) f32; w_taps: (C, 9) f32."""
    x_flat = x_nchw.reshape(NC, HW)                   # free re-layout
    w_full = jnp.tile(w_taps, (N, 1))                 # (NC, 9)
    out_flat = pl.pallas_call(
        dwconv3x3_kernel,
        out_shape=jax.ShapeDtypeStruct((NC, HW), jnp.float32),
        in_specs=[
            pl.BlockSpec((NC, HW), lambda: (0, 0)),
            pl.BlockSpec((NC, K * K), lambda: (0, 0)),
        ],
        out_specs=pl.BlockSpec((NC, HW), lambda: (0, 0)),
    )(x_flat, w_full)
    return out_flat.reshape(N, C, H, W)


# ---- weight synthesis (the module's `weight` property, in JAX) ---------------
def gaussian_kernel2d(ksize, sigma):
    # kornia-style: normalized 1D gaussian, outer product.
    xs = jnp.arange(ksize, dtype=jnp.float32) - (ksize - 1) / 2.0
    g = jnp.exp(-(xs ** 2) / (2.0 * sigma ** 2))
    g = g / jnp.sum(g)
    return jnp.outer(g, g)


def build_weight(l4, l8, sobel, roberts, sigma1, sigma2):
    # Parameter clamps (the torch property mutates .data; functional here).
    l4 = jnp.clip(l4, 0.0, 2.0)
    l8 = jnp.clip(l8, 0.0, 2.0)
    sobel = jnp.clip(sobel, 0.0, 2.0)
    roberts = jnp.clip(roberts, 0.0, 1.0)

    i_k = jnp.array([[0, 0, 0], [0, 1, 0], [0, 0, 0]], jnp.float32)
    mask_l4 = jnp.array([[0, 1, 0], [1, 0, 1], [0, 1, 0]], jnp.float32) / 4.0
    mask_l8 = jnp.array([[1, 1, 1], [1, 0, 1], [1, 1, 1]], jnp.float32) / 8.0
    sx = jnp.array([[0, 0, 0], [-1, 0, 1], [0, 0, 0]], jnp.float32)
    mask_sx = jnp.array([[-1, 0, 1], [0, 0, 0], [-1, 0, 1]], jnp.float32) / 4.0
    sy = jnp.array([[0, -1, 0], [0, 0, 0], [0, 1, 0]], jnp.float32)
    mask_sy = jnp.array([[-1, 0, -1], [0, 0, 0], [1, 0, 1]], jnp.float32) / 4.0
    rx = jnp.array([[-1, 0, 0], [0, 0, 0], [0, 0, 1]], jnp.float32)
    ry = jnp.array([[0, 0, 1], [0, 0, 0], [-1, 0, 0]], jnp.float32)
    mask_rx = jnp.array([[0, -1, 0], [-1, 0, 1], [0, 1, 0]], jnp.float32) / 2.0
    mask_ry = jnp.array([[0, 1, 0], [-1, 0, 1], [0, -1, 0]], jnp.float32) / 2.0

    pieces = []
    if EDGE_CHS > 0:
        edge = jnp.stack([
            l4 * i_k - mask_l4,
            l8 * i_k - mask_l8,
            sobel * sx + mask_sx,
            sobel * sy + mask_sy,
            roberts * rx + mask_rx,
            roberts * ry + mask_ry,
        ])                                            # (6, 3, 3)
        pieces.append(jnp.tile(edge, (EDGE_CHS // 6, 1, 1)))
    if GAUSS_CHS > 0:
        gauss = jnp.stack([gaussian_kernel2d(K, sigma1),
                           gaussian_kernel2d(K, sigma2)])  # (2, 3, 3)
        pieces.append(jnp.tile(gauss, (GAUSS_CHS // 2, 1, 1)))
    return jnp.concatenate(pieces, axis=0)            # (C, 3, 3)


# ---- pure-JAX reference ------------------------------------------------------
def reference_forward(x_nchw, w_c33):
    w_oihw = w_c33[:, None, :, :]                     # (C, 1, 3, 3)
    return jax.lax.conv_general_dilated(
        x_nchw, w_oihw, window_strides=(1, 1), padding=((1, 1), (1, 1)),
        dimension_numbers=("NCHW", "OIHW", "NCHW"), feature_group_count=C)


if __name__ == "__main__":
    key = jax.random.PRNGKey(0)
    k_x, k_p = jax.random.split(key)
    x = jax.random.normal(k_x, (N, C, H, W), jnp.float32)

    pk = jax.random.split(k_p, 6)
    l4 = 1.0 + 0.3 * jax.random.normal(pk[0], (), jnp.float32)
    l8 = 1.0 + 0.3 * jax.random.normal(pk[1], (), jnp.float32)
    sobel = 0.5 + 0.2 * jax.random.normal(pk[2], (), jnp.float32)
    roberts = 0.25 + 0.1 * jax.random.normal(pk[3], (), jnp.float32)
    sigma1 = 1.0 + 0.2 * jnp.abs(jax.random.normal(pk[4], (), jnp.float32))
    sigma2 = 0.8 + 0.2 * jnp.abs(jax.random.normal(pk[5], (), jnp.float32))

    w_c33 = build_weight(l4, l8, sobel, roberts, sigma1, sigma2)   # (C, 3, 3)
    w_taps = w_c33.reshape(C, K * K)                               # (C, 9)

    out = sdd_depthwise_conv2d(x, w_taps)
    out = jax.block_until_ready(out)

    ref = reference_forward(x, w_c33)

    assert out.shape == (N, C, H, W)
    assert jnp.allclose(out, ref, atol=1e-4, rtol=1e-4), (
        float(jnp.max(jnp.abs(out - ref))))
    print("KERNEL_OK")
</pallas_src>

<mosaic_0001>
module attributes {stable_mosaic.version = 11 : i64} {
  func.func @dwconv3x3_kernel(%arg0: memref<16x256xf32, #tpu.memory_space<vmem>>, %arg1: memref<16x9xf32, #tpu.memory_space<vmem>>, %arg2: memref<16x256xf32, #tpu.memory_space<vmem>>) attributes {dimension_semantics = [], scalar_prefetch = 0 : i64, scratch_operands = 0 : i64, tpu.core_type = #tpu.core_type<tc>} {
    %c0 = arith.constant 0 : index
    %c0_0 = arith.constant 0 : index
    %0 = vector.load %arg0[%c0, %c0_0] : memref<16x256xf32, #tpu.memory_space<vmem>>, vector<16x256xf32>
    %c0_1 = arith.constant 0 : index
    %c0_2 = arith.constant 0 : index
    %1 = vector.load %arg1[%c0_1, %c0_2] : memref<16x9xf32, #tpu.memory_space<vmem>>, vector<16x9xf32>
    %2 = tpu.iota {dimensions = array<i32: 1>} : vector<16x256xi32>
    %c4_i32 = arith.constant 4 : i32
    %3 = vector.broadcast %c4_i32 : i32 to vector<16x256xi32>
    %4 = arith.shrsi %2, %3 : vector<16x256xi32>
    %c15_i32 = arith.constant 15 : i32
    %5 = vector.broadcast %c15_i32 : i32 to vector<16x256xi32>
    %6 = arith.andi %2, %5 : vector<16x256xi32>
    %c1_i32 = arith.constant 1 : i32
    %7 = vector.broadcast %c1_i32 : i32 to vector<16x256xi32>
    %8 = arith.cmpi sge, %4, %7 : vector<16x256xi32>
    %c15_i32_3 = arith.constant 15 : i32
    %9 = vector.broadcast %c15_i32_3 : i32 to vector<16x256xi32>
    %10 = arith.cmpi slt, %4, %9 : vector<16x256xi32>
    %c1_i32_4 = arith.constant 1 : i32
    %11 = vector.broadcast %c1_i32_4 : i32 to vector<16x256xi32>
    %12 = arith.cmpi sge, %6, %11 : vector<16x256xi32>
    %c15_i32_5 = arith.constant 15 : i32
    %13 = vector.broadcast %c15_i32_5 : i32 to vector<16x256xi32>
    %14 = arith.cmpi slt, %6, %13 : vector<16x256xi32>
    %15 = arith.andi %8, %12 : vector<16x256xi1>
    %16 = arith.andi %8, %14 : vector<16x256xi1>
    %17 = arith.andi %10, %12 : vector<16x256xi1>
    %18 = arith.andi %10, %14 : vector<16x256xi1>
    %19 = vector.extract_strided_slice %1 {offsets = [0, 0], sizes = [16, 1], strides = [1, 1]} : vector<16x9xf32> to vector<16x1xf32>
    %20 = vector.shape_cast %19 : vector<16x1xf32> to vector<16x1xf32>
    %21 = vector.broadcast %20 : vector<16x1xf32> to vector<16x256xf32>
    %22 = vector.extract_strided_slice %1 {offsets = [0, 1], sizes = [16, 1], strides = [1, 1]} : vector<16x9xf32> to vector<16x1xf32>
    %23 = vector.shape_cast %22 : vector<16x1xf32> to vector<16x1xf32>
    %24 = vector.broadcast %23 : vector<16x1xf32> to vector<16x256xf32>
    %25 = vector.extract_strided_slice %1 {offsets = [0, 2], sizes = [16, 1], strides = [1, 1]} : vector<16x9xf32> to vector<16x1xf32>
    %26 = vector.shape_cast %25 : vector<16x1xf32> to vector<16x1xf32>
    %27 = vector.broadcast %26 : vector<16x1xf32> to vector<16x256xf32>
    %28 = vector.extract_strided_slice %1 {offsets = [0, 3], sizes = [16, 1], strides = [1, 1]} : vector<16x9xf32> to vector<16x1xf32>
    %29 = vector.shape_cast %28 : vector<16x1xf32> to vector<16x1xf32>
    %30 = vector.broadcast %29 : vector<16x1xf32> to vector<16x256xf32>
    %31 = vector.extract_strided_slice %1 {offsets = [0, 4], sizes = [16, 1], strides = [1, 1]} : vector<16x9xf32> to vector<16x1xf32>
    %32 = vector.shape_cast %31 : vector<16x1xf32> to vector<16x1xf32>
    %33 = vector.broadcast %32 : vector<16x1xf32> to vector<16x256xf32>
    %34 = vector.extract_strided_slice %1 {offsets = [0, 5], sizes = [16, 1], strides = [1, 1]} : vector<16x9xf32> to vector<16x1xf32>
    %35 = vector.shape_cast %34 : vector<16x1xf32> to vector<16x1xf32>
    %36 = vector.broadcast %35 : vector<16x1xf32> to vector<16x256xf32>
    %37 = vector.extract_strided_slice %1 {offsets = [0, 6], sizes = [16, 1], strides = [1, 1]} : vector<16x9xf32> to vector<16x1xf32>
    %38 = vector.shape_cast %37 : vector<16x1xf32> to vector<16x1xf32>
    %39 = vector.broadcast %38 : vector<16x1xf32> to vector<16x256xf32>
    %40 = vector.extract_strided_slice %1 {offsets = [0, 7], sizes = [16, 1], strides = [1, 1]} : vector<16x9xf32> to vector<16x1xf32>
    %41 = vector.shape_cast %40 : vector<16x1xf32> to vector<16x1xf32>
    %42 = vector.broadcast %41 : vector<16x1xf32> to vector<16x256xf32>
    %43 = vector.extract_strided_slice %1 {offsets = [0, 8], sizes = [16, 1], strides = [1, 1]} : vector<16x9xf32> to vector<16x1xf32>
    %44 = vector.shape_cast %43 : vector<16x1xf32> to vector<16x1xf32>
    %45 = vector.broadcast %44 : vector<16x1xf32> to vector<16x256xf32>
    %cst = arith.constant 0.000000e+00 : f32
    %46 = vector.broadcast %cst : f32 to vector<16x256xf32>
    %c17_i32 = arith.constant 17 : i32
    %47 = tpu.dynamic_rotate %0 by %c17_i32 dim 1 : vector<16x256xf32>, i32 -> vector<16x256xf32>
    %cst_6 = arith.constant 0.000000e+00 : f32
    %48 = vector.broadcast %cst_6 : f32 to vector<16x256xf32>
    %49 = arith.select %15, %47, %48 : vector<16x256xi1>, vector<16x256xf32>
    %50 = arith.mulf %49, %21 : vector<16x256xf32>
    %51 = arith.addf %46, %50 : vector<16x256xf32>
    %c16_i32 = arith.constant 16 : i32
    %52 = tpu.dynamic_rotate %0 by %c16_i32 dim 1 : vector<16x256xf32>, i32 -> vector<16x256xf32>
    %cst_7 = arith.constant 0.000000e+00 : f32
    %53 = vector.broadcast %cst_7 : f32 to vector<16x256xf32>
    %54 = arith.select %8, %52, %53 : vector<16x256xi1>, vector<16x256xf32>
    %55 = arith.mulf %54, %24 : vector<16x256xf32>
    %56 = arith.addf %51, %55 : vector<16x256xf32>
    %c15_i32_8 = arith.constant 15 : i32
    %57 = tpu.dynamic_rotate %0 by %c15_i32_8 dim 1 : vector<16x256xf32>, i32 -> vector<16x256xf32>
    %cst_9 = arith.constant 0.000000e+00 : f32
    %58 = vector.broadcast %cst_9 : f32 to vector<16x256xf32>
    %59 = arith.select %16, %57, %58 : vector<16x256xi1>, vector<16x256xf32>
    %60 = arith.mulf %59, %27 : vector<16x256xf32>
    %61 = arith.addf %56, %60 : vector<16x256xf32>
    %c1_i32_10 = arith.constant 1 : i32
    %62 = tpu.dynamic_rotate %0 by %c1_i32_10 dim 1 : vector<16x256xf32>, i32 -> vector<16x256xf32>
    %cst_11 = arith.constant 0.000000e+00 : f32
    %63 = vector.broadcast %cst_11 : f32 to vector<16x256xf32>
    %64 = arith.select %12, %62, %63 : vector<16x256xi1>, vector<16x256xf32>
    %65 = arith.mulf %64, %30 : vector<16x256xf32>
    %66 = arith.addf %61, %65 : vector<16x256xf32>
    %67 = arith.mulf %0, %33 : vector<16x256xf32>
    %68 = arith.addf %66, %67 : vector<16x256xf32>
    %c255_i32 = arith.constant 255 : i32
    %69 = tpu.dynamic_rotate %0 by %c255_i32 dim 1 : vector<16x256xf32>, i32 -> vector<16x256xf32>
    %cst_12 = arith.constant 0.000000e+00 : f32
    %70 = vector.broadcast %cst_12 : f32 to vector<16x256xf32>
    %71 = arith.select %14, %69, %70 : vector<16x256xi1>, vector<16x256xf32>
    %72 = arith.mulf %71, %36 : vector<16x256xf32>
    %73 = arith.addf %68, %72 : vector<16x256xf32>
    %c241_i32 = arith.constant 241 : i32
    %74 = tpu.dynamic_rotate %0 by %c241_i32 dim 1 : vector<16x256xf32>, i32 -> vector<16x256xf32>
    %cst_13 = arith.constant 0.000000e+00 : f32
    %75 = vector.broadcast %cst_13 : f32 to vector<16x256xf32>
    %76 = arith.select %17, %74, %75 : vector<16x256xi1>, vector<16x256xf32>
    %77 = arith.mulf %76, %39 : vector<16x256xf32>
    %78 = arith.addf %73, %77 : vector<16x256xf32>
    %c240_i32 = arith.constant 240 : i32
    %79 = tpu.dynamic_rotate %0 by %c240_i32 dim 1 : vector<16x256xf32>, i32 -> vector<16x256xf32>
    %cst_14 = arith.constant 0.000000e+00 : f32
    %80 = vector.broadcast %cst_14 : f32 to vector<16x256xf32>
    %81 = arith.select %10, %79, %80 : vector<16x256xi1>, vector<16x256xf32>
    %82 = arith.mulf %81, %42 : vector<16x256xf32>
    %83 = arith.addf %78, %82 : vector<16x256xf32>
    %c239_i32 = arith.constant 239 : i32
    %84 = tpu.dynamic_rotate %0 by %c239_i32 dim 1 : vector<16x256xf32>, i32 -> vector<16x256xf32>
    %cst_15 = arith.constant 0.000000e+00 : f32
    %85 = vector.broadcast %cst_15 : f32 to vector<16x256xf32>
    %86 = arith.select %18, %84, %85 : vector<16x256xi1>, vector<16x256xf32>
    %87 = arith.mulf %86, %45 : vector<16x256xf32>
    %88 = arith.addf %83, %87 : vector<16x256xf32>
    %c0_16 = arith.constant 0 : index
    %c0_17 = arith.constant 0 : index
    %89 = vector.load %arg2[%c0_16, %c0_17] : memref<16x256xf32, #tpu.memory_space<vmem>>, vector<16x256xf32>
    tpu.vector_store %arg2[%c0_16, %c0_17], %88 {strides = array<i32>} : memref<16x256xf32, #tpu.memory_space<vmem>>, vector<16x256xf32>,
    return
  }
}

</mosaic_0001>

<bundles_post_ra>
// kernel: tpu_custom_call.1
= control target key start
LH: loop header
LB: loop body
LE: loop exit
PB: predicated region body
PF: predicated region fallthrough
CT: control target
= control target key end

     0   :  { %7 = vsyncpa [#allocation3], 0  ;;  %s914_s0 = inlined_call_operand.hbm [shape: f32[16,256], index: 0, kind: input, shape index: {}]   ;;  %s915_s1 = inlined_call_operand.hbm [shape: f32[16,9], index: 1, kind: input, shape index: {}]   ;;  %s916_s2 = inlined_call_operand.hbm [shape: f32[16,256], index: 2, kind: output, shape index: {}]  }
   0x1   :  { %8 = vsyncpa [#allocation6], 0 }
   0x2   :  { %9 = vsyncpa [#allocation4], 0  ;;  %s476_s9 = smov [#allocation2]  }
   0x3   :  { %s15_s10 = sshll.u32 %s476_s9, 4  ;;  %s16_s10 = int_to_ptr.vmem [resolvable:$true] %s15_s10 }
   0x4   :  { %s418_s11 = scalar_lea.vmem %s16_s10, 512  ;;  %p423_p1 = scmp.lt.s32.totalorder %s16_s10, %s16_s10 }
   0x5   :  { %p419_p0 = scmp.ne.s32.totalorder %s16_s10, %s418_s11  ;;  %p424_p2 = scmp.lt.s32.totalorder %s418_s11, %s418_s11 }
   0x7   :  { %p425_p3 = por %p424_p2, %p423_p1 }
   0x9   :  { %p426_p4 = pnand %p425_p3, %p419_p0 }
   0xb   :  { %429 = shalt.err (!%p426_p4)
}
   0xc   :  { %s477_s12 = smov 256   ;;  %s478_s13 = smov 16  }
   0xd   :  { %21 = dma.hbm_to_vmem [thread:$0]  %s914_s0, 512, %s16_s10, [#allocation3], %s477_s12, %s477_s12, %s478_s13  }
   0xe   :  { %s479_s16 = smov [#allocation5]  }
   0xf   :  { %s27_s17 = sshll.u32 %s479_s16, 4  ;;  %s28_s17 = int_to_ptr.vmem [resolvable:$true] %s27_s17 }
  0x10   :  { %s438_s18 = scalar_lea.vmem %s28_s17, 256  ;;  %p443_p6 = scmp.lt.s32.totalorder %s28_s17, %s28_s17 }
  0x11   :  { %p439_p5 = scmp.ne.s32.totalorder %s28_s17, %s438_s18  ;;  %p444_p7 = scmp.lt.s32.totalorder %s438_s18, %s438_s18 }
  0x13   :  { %p445_p8 = por %p444_p7, %p443_p6 }
  0x15   :  { %p446_p9 = pnand %p445_p8, %p439_p5 }
  0x17   :  { %449 = shalt.err (!%p446_p9)
}
  0x18   :  { %s480_s19 = smov 128   ;;  %s481_s20 = smov 8  }
  0x19   :  { %33 = dma.hbm_to_vmem [thread:$0]  %s915_s1, 256, %s28_s17, [#allocation6], %s480_s19, %s480_s19, %s481_s20  }
  0x1a   :  { %470 = dma.done.wait [#allocation3], 512  }
  0x1b   :  { %471 = vsyncadd [#allocation3], 4294966784 }
  0x1c   :  { %472 = dma.done.wait [#allocation6], 256  }
  0x1d   :  { %473 = vsyncadd [#allocation6], 4294967040  ;;  %v482_v0 = vmov 1   ;;  %v483_v1 = vmov 0   ;;  %v523_v2 = vld [vmem:[#allocation5] sm:$0xff]  ;;  %v527_v3 = vld [vmem:[#allocation5 + $0x8] sm:$0xff]  ;;  %v46_v23 = vlaneseq }
  0x1e   :  { %397 = vset.pattern.permute.xlu1 %v482_v0  ;;  %396 = vset.pattern.permute.xlu0 %v483_v1  ;;  %v484_v4 = vmov 2   ;;  %v485_v5 = vmov 3   ;;  %v486_v6 = vmov 4   ;;  %v487_v7 = vmov 5   ;;  %v539_v9 = vld [vmem:[#allocation2 + $0x10] sm:$0xff]  ;;  %s489_s0 = smov 17  }
  0x1f   :  { %80 = vperm.xlu1 %397, %v523_v2   ;;  %71 = vperm.xlu0 %396, %v523_v2   ;;  %v488_v8 = vmov 6   ;;  %v543_v10 = vld [vmem:[#allocation2 + $0x18] sm:$0xff]  ;;  %v490_v11 = vmov 8   ;;  %v491_v12 = vmov 7   ;;  %v550_v13 = vld [vmem:[#allocation2] sm:$0xff]  ;;  %v555_v14 = vld [vmem:[#allocation2 + $0x8] sm:$0xff] }
  0x20   :  { %s492_s1 = smov 15   ;;  %s493_s23 = smov 1   ;;  %v603_v26 = vand.u32 127, %v46_v23 }
  0x21   :  { %s494_s24 = smov 127   ;;  %s495_s25 = smov 113  }
  0x22   :  { %s496_s26 = smov 112   ;;  %s497_s27 = smov 111   ;;  %v610_v29 = vadd.s32 128, %v603_v26  ;;  %v49_v32 = vshra.s32 %v603_v26, 4  ;;  %v51_v33 = vand.u32 15, %v603_v26  ;;  %vm151_vm4 = vcmp.lt.s32.totalorder %v603_v26, 17 }
  0x23   :  { %84 = vperm.xlu1 %397, %v527_v3   ;;  %76 = vperm.xlu0 %396, %v527_v3   ;;  %vm176_vm7 = vcmp.lt.s32.totalorder %v603_v26, 16  ;;  %vm201_vm11 = vcmp.lt.s32.totalorder %v603_v26, 15  ;;  %vm226_vm13 = vcmp.lt.s32.totalorder %v603_v26, 1  ;;  %s498_s28 = smov [#allocation7]  }
  0x24   :  { %v50_v34 = vshra.s32 %v610_v29, 4  ;;  %v52_v35 = vand.u32 15, %v610_v29  ;;  %vm620_vm0 = vcmp.ge.s32.totalorder %v49_v32, 1  ;;  %vm624_vm1 = vcmp.ge.s32.totalorder %v51_v33, 1  ;;  %s360_s29 = sshll.u32 %s498_s28, 4  ;;  %s361_s29 = int_to_ptr.vmem [resolvable:$true] %s360_s29 }
  0x25   :  { %vm61_vm5 = vmand %vm620_vm0, %vm624_vm1  ;;  %vm674_vm8 = vcmp.lt.s32.totalorder %v51_v33, 15  ;;  %vm774_vm14 = vcmp.lt.s32.totalorder %v49_v32, 15  ;;  %s450_s30 = scalar_lea.vmem %s361_s29, 512  ;;  %p455_p11 = scmp.lt.s32.totalorder %s361_s29, %s361_s29 }
  0x26   :  { %vm632_vm2 = vcmp.ge.s32.totalorder %v50_v34, 1  ;;  %vm636_vm3 = vcmp.ge.s32.totalorder %v52_v35, 1  ;;  %vm678_vm9 = vcmp.lt.s32.totalorder %v52_v35, 15  ;;  %vm63_vm10 = vmand %vm620_vm0, %vm674_vm8  ;;  %vm780_vm15 = vcmp.lt.s32.totalorder %v50_v34, 15  ;;  %p451_p10 = scmp.ne.s32.totalorder %s361_s29, %s450_s30  ;;  %p456_p12 = scmp.lt.s32.totalorder %s450_s30, %s450_s30 }
  0x27   :  { %399 = vset.pattern.permute.xlu1 %v484_v4  ;;  %398 = vset.pattern.permute.xlu0 %v484_v4  ;;  %vm62_vm6 = vmand %vm632_vm2, %vm636_vm3 }
  0x28   :  { %92 = vperm.xlu1 %399, %v527_v3   ;;  %88 = vperm.xlu0 %398, %v523_v2   ;;  %vm64_vm12 = vmand %vm632_vm2, %vm678_vm9  ;;  %p457_p13 = por %p456_p12, %p455_p11 }
  0x2a   :  { %p458_p0 = pnand %p457_p13, %p451_p10 }
  0x2c   :  { %400 = vset.pattern.permute.xlu1 %v485_v5  ;;  %401 = vset.pattern.permute.xlu0 %v485_v5 }
  0x2d   :  { %96 = vperm.xlu1 %400, %v523_v2   ;;  %100 = vperm.xlu0 %401, %v527_v3  }
  0x31   :  { %402 = vset.pattern.permute.xlu1 %v486_v6  ;;  %403 = vset.pattern.permute.xlu0 %v487_v7 }
  0x32   :  { %104 = vperm.xlu1 %402, %v523_v2   ;;  %112 = vperm.xlu0 %403, %v523_v2  }
  0x36   :  { %108 = vperm.xlu1 %402, %v527_v3   ;;  %406 = vset.pattern.permute.xlu0 %v488_v8 }
  0x37   :  { %124 = vperm.xlu0 %406, %v527_v3  }
  0x3a   :  { %404 = vset.pattern.permute.xlu1 %v487_v7 }
  0x3b   :  { %116 = vperm.xlu1 %404, %v527_v3   ;;  %145 = vrot.lane.b32.xlu0 %v539_v9, %s489_s0 }
  0x3c   :  { %408 = vset.pattern.permute.xlu0 %v490_v11 }
  0x3f   :  { %405 = vset.pattern.permute.xlu1 %v488_v8  ;;  %149 = vrot.lane.b32.xlu0 %v543_v10, %s489_s0 }
  0x40   :  { %120 = vperm.xlu1 %405, %v523_v2  }
  0x43   :  { %170 = vrot.lane.b32.xlu0 %v539_v9, %s478_s13 }
  0x44   :  { %407 = vset.pattern.permute.xlu1 %v491_v12 }
  0x45   :  { %128 = vperm.xlu1 %407, %v523_v2  }
  0x47   :  { %174 = vrot.lane.b32.xlu0 %v543_v10, %s478_s13 }
  0x49   :  { %143 = vrot.lane.b32.xlu1 %v550_v13, %s489_s0 }
  0x4b   :  { %195 = vrot.lane.b32.xlu0 %v539_v9, %s492_s1 }
  0x4d   :  { %147 = vrot.lane.b32.xlu1 %v555_v14, %s489_s0 }
  0x4f   :  { %199 = vrot.lane.b32.xlu0 %v543_v10, %s492_s1 }
  0x51   :  { %168 = vrot.lane.b32.xlu1 %v550_v13, %s478_s13 }
  0x53   :  { %220 = vrot.lane.b32.xlu0 %v539_v9, %s493_s23 }
  0x55   :  { %172 = vrot.lane.b32.xlu1 %v555_v14, %s478_s13 }
  0x57   :  { %224 = vrot.lane.b32.xlu0 %v543_v10, %s493_s23 }
  0x59   :  { %193 = vrot.lane.b32.xlu1 %v550_v13, %s492_s1 }
  0x5b   :  { %253 = vrot.lane.b32.xlu0 %v539_v9, %s494_s24 }
  0x5d   :  { %197 = vrot.lane.b32.xlu1 %v555_v14, %s492_s1 }
  0x5f   :  { %257 = vrot.lane.b32.xlu0 %v543_v10, %s494_s24 }
  0x61   :  { %218 = vrot.lane.b32.xlu1 %v550_v13, %s493_s23 }
  0x63   :  { %276 = vrot.lane.b32.xlu0 %v550_v13, %s495_s25 }
  0x65   :  { %222 = vrot.lane.b32.xlu1 %v555_v14, %s493_s23 }
  0x67   :  { %280 = vrot.lane.b32.xlu0 %v555_v14, %s495_s25 }
  0x69   :  { %251 = vrot.lane.b32.xlu1 %v550_v13, %s494_s24 }
  0x6b   :  { %136 = vperm.xlu0 %408, %v523_v2  }
  0x6d   :  { %255 = vrot.lane.b32.xlu1 %v555_v14, %s494_s24 }
  0x6f   :  { %303 = vrot.lane.b32.xlu0 %v539_v9, %s496_s26 }
  0x71   :  { %132 = vperm.xlu1 %407, %v527_v3  }
  0x73   :  { %307 = vrot.lane.b32.xlu0 %v543_v10, %s496_s26 }
  0x75   :  { %278 = vrot.lane.b32.xlu1 %v539_v9, %s495_s25 }
  0x76   :  { %409 = vset.pattern.permute.xlu1 %v490_v11 }
  0x77   :  { %328 = vrot.lane.b32.xlu0 %v539_v9, %s497_s27 }
  0x79   :  { %282 = vrot.lane.b32.xlu1 %v543_v10, %s495_s25 }
  0x7b   :  { %332 = vrot.lane.b32.xlu0 %v543_v10, %s497_s27 }
  0x7d   :  { %140 = vperm.xlu1 %409, %v527_v3  }
  0x81   :  { %301 = vrot.lane.b32.xlu1 %v550_v13, %s496_s26 }
  0x85   :  { %305 = vrot.lane.b32.xlu1 %v555_v14, %s496_s26 }
  0x89   :  { %326 = vrot.lane.b32.xlu1 %v550_v13, %s497_s27 }
  0x8d   :  { %330 = vrot.lane.b32.xlu1 %v555_v14, %s497_s27 }
  0x9a   :  { %v589_v15 = vpop.permute.xlu1 %80  ;;  %v591_v16 = vpop.permute.xlu0 %71 }
  0x9e   :  { %v85_v17 = vpop.permute.xlu1 %84  ;;  %v77_v18 = vpop.permute.xlu0 %76 }
  0xa3   :  { %v93_v19 = vpop.permute.xlu1 %92  ;;  %v593_v20 = vpop.permute.xlu0 %88 }
  0xa8   :  { %v595_v21 = vpop.permute.xlu1 %96  ;;  %v597_v22 = vpop.permute.xlu0 %100 }
  0xad   :  { %v599_v24 = vpop.permute.xlu1 %104  ;;  %v601_v25 = vpop.permute.xlu0 %112 }
  0xb1   :  { %v605_v27 = vpop.permute.xlu1 %108 }
  0xb2   :  { %v607_v28 = vpop.permute.xlu0 %124 }
  0xb6   :  { %v612_v30 = vpop.permute.xlu1 %116  ;;  %v146_v31 = vpop.permute.xlu0 %145 }
  0xba   :  { %v150_v36 = vpop.permute.xlu0 %149 }
  0xbb   :  { %v628_v39 = vpop.permute.xlu1 %120  ;;  %v153_v43 = vsel %vm151_vm4, %v146_v31, %v150_v36  ;;  %v155_v44 = vsel %vm151_vm4, %v150_v36, %v146_v31 }
  0xbc   :  { %v158_v46 = vsel %vm61_vm5, %v155_v44, 0.0  ;;  %v159_v47 = vsel %vm62_vm6, %v153_v43, 0.0 }
  0xbd   :  { %v162_v55 = vmul.f32 %v158_v46, %v77_v18  ;;  %v163_v56 = vmul.f32 %v159_v47, %v77_v18 }
  0xbe   :  { %v171_v42 = vpop.permute.xlu0 %170 }
  0xc0   :  { %v653_v45 = vpop.permute.xlu1 %128 }
  0xc2   :  { %v175_v48 = vpop.permute.xlu0 %174 }
  0xc3   :  { %v178_v49 = vsel %vm176_vm7, %v171_v42, %v175_v48  ;;  %v180_v50 = vsel %vm176_vm7, %v175_v48, %v171_v42 }
  0xc4   :  { %v183_v51 = vsel %vm620_vm0, %v180_v50, 0.0  ;;  %v184_v52 = vsel %vm632_vm2, %v178_v49, 0.0  ;;  %v144_v53 = vpop.permute.xlu1 %143 }
  0xc5   :  { %v187_v57 = vmul.f32 %v183_v51, %v85_v17  ;;  %v188_v58 = vmul.f32 %v184_v52, %v85_v17 }
  0xc6   :  { %v196_v59 = vpop.permute.xlu0 %195 }
  0xc7   :  { %v191_v61 = vadd.f32 %v187_v57, %v162_v55  ;;  %v192_v62 = vadd.f32 %v188_v58, %v163_v56 }
  0xc8   :  { %v148_v63 = vpop.permute.xlu1 %147 }
  0xc9   :  { %v152_v3 = vsel %vm151_vm4, %v144_v53, %v148_v63  ;;  %v154_v4 = vsel %vm151_vm4, %v148_v63, %v144_v53  ;;  %vm66_vm4 = vmand %vm780_vm15, %vm636_vm3 }
  0xca   :  { %v200_v0 = vpop.permute.xlu0 %199  ;;  %v156_v17 = vsel %vm61_vm5, %v154_v4, 0.0  ;;  %v157_v18 = vsel %vm62_vm6, %v152_v3, 0.0  ;;  %vm259_vm5 = vcmp.lt.s32.totalorder %v603_v26, 127  ;;  %vm309_vm6 = vcmp.lt.s32.totalorder %v603_v26, 112 }
  0xcb   :  { %v203_v1 = vsel %vm201_vm11, %v196_v59, %v200_v0  ;;  %v205_v2 = vsel %vm201_vm11, %v200_v0, %v196_v59  ;;  %v160_v36 = vmul.f32 %v156_v17, %v591_v16  ;;  %v161_v42 = vmul.f32 %v157_v18, %v591_v16 }
  0xcc   :  { %v208_v5 = vsel %vm63_vm10, %v205_v2, 0.0  ;;  %v209_v6 = vsel %vm64_vm12, %v203_v1, 0.0  ;;  %v169_v7 = vpop.permute.xlu1 %168 }
  0xcd   :  { %v212_v8 = vmul.f32 %v208_v5, %v93_v19  ;;  %v213_v11 = vmul.f32 %v209_v6, %v93_v19 }
  0xce   :  { %v221_v12 = vpop.permute.xlu0 %220 }
  0xcf   :  { %v216_v23 = vadd.f32 %v212_v8, %v191_v61  ;;  %v217_v31 = vadd.f32 %v213_v11, %v192_v62 }
  0xd0   :  { %v173_v33 = vpop.permute.xlu1 %172 }
  0xd1   :  { %v177_v19 = vsel %vm176_vm7, %v169_v7, %v173_v33  ;;  %v179_v35 = vsel %vm176_vm7, %v173_v33, %v169_v7  ;;  %vm334_vm7 = vcmp.lt.s32.totalorder %v603_v26, 111 }
  0xd2   :  { %v181_v43 = vsel %vm620_vm0, %v179_v35, 0.0  ;;  %v182_v44 = vsel %vm632_vm2, %v177_v19, 0.0  ;;  %v225_v46 = vpop.permute.xlu0 %224  ;;  %vm284_vm0 = vcmp.lt.s32.totalorder %v603_v26, 113  ;;  %v243_v19 = vmul.f32 %v599_v24, %v550_v13  ;;  %vm65_vm2 = vmand %vm774_vm14, %vm624_vm1 }
  0xd3   :  { %v185_v47 = vmul.f32 %v181_v43, %v589_v15  ;;  %v186_v48 = vmul.f32 %v182_v44, %v589_v15  ;;  %v228_v49 = vsel %vm226_vm13, %v221_v12, %v225_v46  ;;  %v230_v50 = vsel %vm226_vm13, %v225_v46, %v221_v12 }
  0xd4   :  { %v233_v16 = vsel %vm624_vm1, %v230_v50, 0.0  ;;  %v234_v51 = vsel %vm636_vm3, %v228_v49, 0.0  ;;  %v194_v52 = vpop.permute.xlu1 %193 }
  0xd5   :  { %v189_v53 = vadd.f32 %v185_v47, %v160_v36  ;;  %v190_v55 = vadd.f32 %v186_v48, %v161_v42  ;;  %v237_v56 = vmul.f32 %v233_v16, %v597_v22  ;;  %v238_v57 = vmul.f32 %v234_v51, %v597_v22 }
  0xd6   :  { %v254_v15 = vpop.permute.xlu0 %253 }
  0xd7   :  { %v742_v58 = vadd.f32 %v237_v56, %v216_v23  ;;  %v744_v59 = vadd.f32 %v238_v57, %v217_v31 }
  0xd8   :  { %v198_v61 = vpop.permute.xlu1 %197 }
  0xd9   :  { %v202_v62 = vsel %vm201_vm11, %v194_v52, %v198_v61  ;;  %v204_v63 = vsel %vm201_vm11, %v198_v61, %v194_v52  ;;  %vm68_vm11 = vmand %vm780_vm15, %vm678_vm9 }
  0xda   :  { %v206_v0 = vsel %vm63_vm10, %v204_v63, 0.0  ;;  %v207_v22 = vsel %vm64_vm12, %v202_v62, 0.0  ;;  %v258_v1 = vpop.permute.xlu0 %257  ;;  %vm67_vm10 = vmand %vm774_vm14, %vm674_vm8 }
  0xdb   :  { %v210_v2 = vmul.f32 %v206_v0, %v593_v20  ;;  %v211_v3 = vmul.f32 %v207_v22, %v593_v20  ;;  %v261_v50 = vsel %vm259_vm5, %v254_v15, %v258_v1  ;;  %v263_v16 = vsel %vm259_vm5, %v258_v1, %v254_v15 }
  0xdc   :  { %v219_v4 = vpop.permute.xlu1 %218  ;;  %v266_v62 = vsel %vm674_vm8, %v261_v50, 0.0  ;;  %v267_v63 = vsel %vm678_vm9, %v263_v16, 0.0 }
  0xdd   :  { %v214_v5 = vadd.f32 %v210_v2, %v189_v53  ;;  %v215_v6 = vadd.f32 %v211_v3, %v190_v55  ;;  %v270_v2 = vmul.f32 %v266_v62, %v612_v30  ;;  %v271_v3 = vmul.f32 %v267_v63, %v612_v30 }
  0xde   :  { %v277_v7 = vpop.permute.xlu0 %276 }
  0xe0   :  { %v223_v37 = vpop.permute.xlu1 %222 }
  0xe1   :  { %v227_v8 = vsel %vm226_vm13, %v219_v4, %v223_v37  ;;  %v229_v40 = vsel %vm226_vm13, %v223_v37, %v219_v4 }
  0xe2   :  { %v231_v11 = vsel %vm624_vm1, %v229_v40, 0.0  ;;  %v232_v12 = vsel %vm636_vm3, %v227_v8, 0.0  ;;  %v281_v17 = vpop.permute.xlu0 %280 }
  0xe3   :  { %v235_v20 = vmul.f32 %v231_v11, %v595_v21  ;;  %v236_v18 = vmul.f32 %v232_v12, %v595_v21  ;;  %v244_v21 = vmul.f32 %v599_v24, %v555_v14  ;;  %v285_v13 = vsel %vm284_vm0, %v277_v7, %v281_v17 }
  0xe4   :  { %v252_v33 = vpop.permute.xlu1 %251  ;;  %v287_v14 = vsel %vm284_vm0, %v281_v17, %v277_v7  ;;  %v289_v44 = vsel %vm65_vm2, %v285_v13, 0.0 }
  0xe5   :  { %v239_v35 = vadd.f32 %v235_v20, %v214_v5  ;;  %v240_v32 = vadd.f32 %v236_v18, %v215_v6  ;;  %v290_v46 = vsel %vm66_vm4, %v287_v14, 0.0  ;;  %v293_v55 = vmul.f32 %v289_v44, %v628_v39 }
  0xe6   :  { %v793_v29 = vpop.permute.xlu0 %136  ;;  %v294_v56 = vmul.f32 %v290_v46, %v628_v39  ;;  %v246_v39 = vmul.f32 %v605_v27, %v543_v10 }
  0xe7   :  { %v248_v24 = vadd.f32 %v244_v21, %v240_v32  ;;  %v247_v34 = vadd.f32 %v243_v19, %v239_v35 }
  0xe8   :  { %v256_v36 = vpop.permute.xlu1 %255  ;;  %v250_v5 = vadd.f32 %v246_v39, %v744_v59 }
  0xe9   :  { %v260_v42 = vsel %vm259_vm5, %v252_v33, %v256_v36  ;;  %v262_v43 = vsel %vm259_vm5, %v256_v36, %v252_v33 }
  0xea   :  { %v264_v47 = vsel %vm674_vm8, %v260_v42, 0.0  ;;  %v265_v48 = vsel %vm678_vm9, %v262_v43, 0.0  ;;  %v304_v49 = vpop.permute.xlu0 %303  ;;  %v275_v10 = vadd.f32 %v271_v3, %v250_v5 }
  0xeb   :  { %v268_v51 = vmul.f32 %v264_v47, %v601_v25  ;;  %v269_v52 = vmul.f32 %v265_v48, %v601_v25  ;;  %v245_v25 = vmul.f32 %v605_v27, %v539_v9 }
  0xec   :  { %v133_v53 = vpop.permute.xlu1 %132 }
  0xed   :  { %v272_v57 = vadd.f32 %v268_v51, %v247_v34  ;;  %v273_v61 = vadd.f32 %v269_v52, %v248_v24  ;;  %v249_v6 = vadd.f32 %v245_v25, %v742_v58 }
  0xee   :  { %v308_v0 = vpop.permute.xlu0 %307 }
  0xef   :  { %v298_v22 = vadd.f32 %v294_v56, %v273_v61  ;;  %v297_v15 = vadd.f32 %v293_v55, %v272_v57  ;;  %v311_v7 = vsel %vm309_vm6, %v304_v49, %v308_v0  ;;  %v313_v37 = vsel %vm309_vm6, %v308_v0, %v304_v49 }
  0xf0   :  { %v279_v1 = vpop.permute.xlu1 %278  ;;  %v274_v9 = vadd.f32 %v270_v2, %v249_v6  ;;  %v316_v58 = vsel %vm774_vm14, %v311_v7, 0.0  ;;  %v317_v59 = vsel %vm780_vm15, %v313_v37, 0.0 }
  0xf1   :  { %v321_v21 = vmul.f32 %v317_v59, %v133_v53 }
  0xf2   :  { %v329_v4 = vpop.permute.xlu0 %328 }
  0xf4   :  { %v283_v8 = vpop.permute.xlu1 %282 }
  0xf5   :  { %v286_v27 = vsel %vm284_vm0, %v279_v1, %v283_v8  ;;  %v288_v30 = vsel %vm284_vm0, %v283_v8, %v279_v1 }
  0xf6   :  { %v291_v40 = vsel %vm65_vm2, %v286_v27, 0.0  ;;  %v292_v11 = vsel %vm66_vm4, %v288_v30, 0.0  ;;  %v333_v12 = vpop.permute.xlu0 %332 }
  0xf7   :  { %v295_v17 = vmul.f32 %v291_v40, %v607_v28  ;;  %v296_v20 = vmul.f32 %v292_v11, %v607_v28  ;;  %v336_v18 = vsel %vm334_vm7, %v329_v4, %v333_v12  ;;  %v338_v33 = vsel %vm334_vm7, %v333_v12, %v329_v4 }
  0xf8   :  { %v341_v38 = vsel %vm67_vm10, %v336_v18, 0.0  ;;  %v342_v41 = vsel %vm68_vm11, %v338_v33, 0.0  ;;  %v141_v19 = vpop.permute.xlu1 %140  ;;  %v320_v28 = vmul.f32 %v316_v58, %v133_v53 }
  0xf9   :  { %v299_v35 = vadd.f32 %v295_v17, %v274_v9  ;;  %v300_v32 = vadd.f32 %v296_v20, %v275_v10  ;;  %v345_v24 = vmul.f32 %v341_v38, %v141_v19  ;;  %v346_v34 = vmul.f32 %v342_v41, %v141_v19 }
  0xfb   :  { %v324_v13 = vadd.f32 %v320_v28, %v299_v35  ;;  %v325_v14 = vadd.f32 %v321_v21, %v300_v32 }
  0xfc   :  { %v302_v36 = vpop.permute.xlu1 %301 }
  0xfd   :  { %v349_v42 = vadd.f32 %v345_v24, %v324_v13  ;;  %v350_v43 = vadd.f32 %v346_v34, %v325_v14 }
  0xff   :  { %353 = vst [vmem:[#allocation7 + $0x10] sm:$0xff] %v349_v42  ;;  %354 = vst [vmem:[#allocation7 + $0x18] sm:$0xff] %v350_v43 }
 0x100   :  { %v306_v44 = vpop.permute.xlu1 %305 }
 0x101   :  { %v310_v46 = vsel %vm309_vm6, %v302_v36, %v306_v44  ;;  %v312_v47 = vsel %vm309_vm6, %v306_v44, %v302_v36 }
 0x102   :  { %v314_v48 = vsel %vm774_vm14, %v310_v46, 0.0  ;;  %v315_v49 = vsel %vm780_vm15, %v312_v47, 0.0 }
 0x103   :  { %v318_v50 = vmul.f32 %v314_v48, %v653_v45  ;;  %v319_v16 = vmul.f32 %v315_v49, %v653_v45 }
 0x104   :  { %v327_v51 = vpop.permute.xlu1 %326 }
 0x105   :  { %v322_v52 = vadd.f32 %v318_v50, %v297_v15  ;;  %v323_v53 = vadd.f32 %v319_v16, %v298_v22 }
 0x108   :  { %v331_v55 = vpop.permute.xlu1 %330 }
 0x109   :  { %v335_v56 = vsel %vm334_vm7, %v327_v51, %v331_v55  ;;  %v337_v57 = vsel %vm334_vm7, %v331_v55, %v327_v51 }
 0x10a   :  { %v339_v61 = vsel %vm67_vm10, %v335_v56, 0.0  ;;  %v340_v45 = vsel %vm68_vm11, %v337_v57, 0.0 }
 0x10b   :  { %v343_v62 = vmul.f32 %v339_v61, %v793_v29  ;;  %v344_v63 = vmul.f32 %v340_v45, %v793_v29 }
 0x10d   :  { %v347_v26 = vadd.f32 %v343_v62, %v322_v52  ;;  %v348_v0 = vadd.f32 %v344_v63, %v323_v53 }
 0x10f   :  { %351 = vst [vmem:[#allocation7] sm:$0xff] %v347_v26  ;;  %352 = vst [vmem:[#allocation7 + $0x8] sm:$0xff] %v348_v0 }
 0x110   :  { %461 = shalt.err (!%p458_p0)
}
 0x111   :  { %366 = dma.vmem_to_hbm [thread:$0]  %s361_s29, 512, %s916_s2, [#allocation4], %s477_s12, %s477_s12, %s478_s13  }
 0x112   :  { %474 = dma.done.wait [#allocation4], 512  }
 0x113   :  { %475 = vsyncadd [#allocation4], 4294966784 }
 0x114   :  { %370 = vsyncpa [#allocation3], 1 }
 0x115   :  { %371 = vsyncpa [#allocation6], 1 }
 0x116   :  { %372 = vsyncpa [#allocation4], 1 }

</bundles_post_ra>
